<compile_context>
chip_gen: v5e
topology: v5e:2x2
jax: 0.10.0
libtpu: 0.0.40
codegen_flags: <defaults>
</compile_context>

<pallas_src>
import functools

import jax
import jax.numpy as jnp
from jax.experimental import pallas as pl
from jax.experimental.pallas import tpu as pltpu

LN_EPS = 1e-5  # nn.LayerNorm default


def classifier_kernel(x_ref, gamma_ref, beta_ref, w_ref, b_ref, o_ref, xhat_ref):
    # x_ref:     (tm, D)
    # gamma_ref: (1, D)     beta_ref: (1, D)
    # w_ref:     (D, tn)    b_ref:    (1, tn)
    # o_ref:     (tm, tn)   xhat_ref: (tm, D) scratch (MXU dtype), persists over j
    #
    # LayerNorm only on the first column step of each row tile; the column grid
    # axis is sequential ("arbitrary") so j > 0 reuses the cached x_hat.
    @pl.when(pl.program_id(1) == 0)
    def _():
        x = x_ref[...].astype(jnp.float32)
        mean = jnp.mean(x, axis=-1, keepdims=True)
        centered = x - mean
        var = jnp.mean(centered * centered, axis=-1, keepdims=True)  # biased, like PyTorch
        x_hat = centered * jax.lax.rsqrt(var + LN_EPS)
        x_hat = (x_hat * gamma_ref[...].astype(jnp.float32)
                 + beta_ref[...].astype(jnp.float32))
        xhat_ref[...] = x_hat.astype(xhat_ref.dtype)

    # Linear: MXU-native operand dtype with f32 accumulation.
    y = jnp.dot(xhat_ref[...], w_ref[...], preferred_element_type=jnp.float32)
    y = y + b_ref[...].astype(jnp.float32)
    o_ref[...] = y.astype(o_ref.dtype)


def _round_up(x, m):
    return (x + m - 1) // m * m


def _round_down(x, m):
    return max(m, x // m * m)


def _vmem_capacity_bytes():
    try:
        cap = getattr(pltpu.get_tpu_info(), "vmem_capacity_bytes", None)
        if cap:
            return int(cap)
    except Exception:
        pass
    return 64 * 1024 * 1024  # conservative default (v7x per-TensorCore)


@functools.partial(jax.jit, static_argnames=("block_rows", "block_cols", "out_dtype"))
def classifier_forward(x, gamma, beta, w, b, *, block_rows=1024, block_cols=512,
                       out_dtype=None):
    """x: [B, S, D] -> [B, S, C]   (LayerNorm(D) followed by Linear(D -> C))."""
    B, S, D = x.shape
    C = w.shape[1]
    M = B * S
    out_dtype = x.dtype if out_dtype is None else jnp.dtype(out_dtype)

    # MXU operand dtype = weight's native dtype (pre-cast W to bf16 once at
    # parameter setup for ~3-6x MXU throughput when compute-bound).
    mxu_dtype = w.dtype

    itemsize = x.dtype.itemsize
    row_align = 32 if itemsize == 1 else (16 if itemsize == 2 else 8)
    block_rows = _round_down(int(block_rows), row_align)
    block_cols = _round_down(int(block_cols), 128)

    # Row tile: full extent if M fits in one tile, else aligned block_rows with a
    # partial trailing block (no padding copy of x).
    tm = M if M <= block_rows else block_rows

    # Column tile: lane-dense multiple of 128 when possible; tiny heads use the
    # full extent (masked stores, negligible).  No padding copy of W.
    if C <= block_cols and C % 128 != 0:
        tn = C
        tn_shrinkable = False
    else:
        tn = min(block_cols, C)
        tn_shrinkable = True

    # VMEM budget: double-buffered I/O tiles + cached x_hat scratch + f32 LN
    # temporaries, against a generation-aware limit (v5e/v6e 128 MiB physical,
    # v7x 64 MiB per TC).
    vmem_limit = min(int(_vmem_capacity_bytes() * 0.75), 100 * 1024 * 1024)
    budget = int(vmem_limit * 0.8)

    def vmem_bytes(tm_, tn_):
        return (2 * tm_ * D * x.dtype.itemsize               # x tile, double-buffered
                + 2 * D * tn_ * w.dtype.itemsize              # W tile, double-buffered
                + 2 * tm_ * tn_ * out_dtype.itemsize          # out tile, double-buffered
                + tm_ * D * jnp.dtype(mxu_dtype).itemsize     # cached x_hat scratch
                + 2 * tm_ * D * 4                             # f32 LN intermediates (j==0)
                + 2 * (2 * D * 4 + tn_ * 4))                  # gamma/beta/bias

    # Shrink tn first (down to 256), keep tm >= 256 while tn > 256: tm controls
    # how many times W is streamed from HBM ((M/tm) * D * C bytes).
    while vmem_bytes(tm, tn) > budget:
        if tn_shrinkable and tn > 256:
            tn = _round_down(tn // 2, 128)
        elif tm > 256:
            tm = _round_down(tm // 2, row_align)
        elif tn_shrinkable and tn > 128:
            tn = _round_down(tn // 2, 128)
        elif tm > row_align:
            tm = _round_down(tm // 2, row_align)
        else:
            break

    grid = (pl.cdiv(M, tm), pl.cdiv(C, tn))
    n_row_tiles = grid[0]

    x2d = x.reshape(M, D)
    gamma2d = gamma.reshape(1, D)
    beta2d = beta.reshape(1, D)
    bias2d = b.reshape(1, C)

    cost = pl.CostEstimate(
        flops=2 * M * D * C + 7 * M * D,
        transcendentals=M,  # one rsqrt per row (LN computed once per row tile)
        bytes_accessed=(M * D * x.dtype.itemsize
                        + n_row_tiles * D * C * w.dtype.itemsize  # W re-read per row tile
                        + M * C * out_dtype.itemsize),
    )

    out2d = pl.pallas_call(
        classifier_kernel,
        out_shape=jax.ShapeDtypeStruct((M, C), out_dtype),
        grid_spec=pltpu.PrefetchScalarGridSpec(
            num_scalar_prefetch=0,
            grid=grid,
            in_specs=[
                pl.BlockSpec((tm, D), lambda i, j: (i, 0)),   # x row tile (not re-DMA'd over j)
                pl.BlockSpec((1, D), lambda i, j: (0, 0)),    # LN gamma
                pl.BlockSpec((1, D), lambda i, j: (0, 0)),    # LN beta
                pl.BlockSpec((D, tn), lambda i, j: (0, j)),   # W column tile
                pl.BlockSpec((1, tn), lambda i, j: (0, j)),   # bias column tile
            ],
            out_specs=pl.BlockSpec((tm, tn), lambda i, j: (i, j)),
            scratch_shapes=[pltpu.VMEM((tm, D), mxu_dtype)],  # cached x_hat per row tile
        ),
        compiler_params=pltpu.CompilerParams(
            # rows shard across TensorCores; columns sequential so the LN cache
            # computed at j==0 is valid for all j of the same row tile.
            dimension_semantics=("parallel", "arbitrary"),
            vmem_limit_bytes=int(vmem_limit),
        ),
        cost_estimate=cost,
    )(x2d, gamma2d, beta2d, w, bias2d)

    return out2d.reshape(B, S, C)


def reference_forward(x, gamma, beta, w, b):
    xf = x.astype(jnp.float32)
    mean = jnp.mean(xf, axis=-1, keepdims=True)
    var = jnp.mean((xf - mean) ** 2, axis=-1, keepdims=True)
    x_hat = (xf - mean) * jax.lax.rsqrt(var + LN_EPS)
    x_hat = x_hat * gamma + beta
    return (x_hat @ w + b).astype(x.dtype)


if __name__ == "__main__":
    def make_inputs(key, B, S, D, C, dtype=jnp.float32):
        kx, kw, kb, kg, kbeta = jax.random.split(key, 5)
        x = jax.random.normal(kx, (B, S, D), dtype=dtype)
        # Synthetic parameters (shapes from __init__):
        #   LN:     weight/bias of shape (D,)
        #   Linear: weight (C, D) in PyTorch -> stored here transposed as (D, C)
        gamma = 1.0 + 0.1 * jax.random.normal(kg, (D,), dtype=jnp.float32)
        beta = 0.1 * jax.random.normal(kbeta, (D,), dtype=jnp.float32)
        w = jax.random.normal(kw, (D, C), dtype=jnp.float32) / jnp.sqrt(D)
        b = 0.01 * jax.random.normal(kb, (C,), dtype=jnp.float32)
        return x, gamma, beta, w, b

    # Case 1: module-sized small shapes (single tile): x [2, 8, 32] -> [2, 8, 16].
    x, gamma, beta, w, b = make_inputs(jax.random.PRNGKey(0), 2, 8, 32, 16)
    out = jax.block_until_ready(classifier_forward(x, gamma, beta, w, b))
    ref = reference_forward(x, gamma, beta, w, b)
    assert out.shape == (2, 8, 16), out.shape
    assert jnp.allclose(out, ref, atol=1e-3, rtol=1e-3), "mismatch vs reference (case 1)"

    # Case 2: multi-tile grid with partial trailing row/column blocks and LN-cache
    # reuse across the column axis (grid = (3, 2) with these tile overrides).
    x, gamma, beta, w, b = make_inputs(jax.random.PRNGKey(1), 2, 160, 128, 200)
    out = jax.block_until_ready(
        classifier_forward(x, gamma, beta, w, b, block_rows=128, block_cols=128))
    ref = reference_forward(x, gamma, beta, w, b)
    assert out.shape == (2, 160, 200), out.shape
    assert jnp.allclose(out, ref, atol=1e-3, rtol=1e-3), "mismatch vs reference (case 2)"

    print("KERNEL_OK")
</pallas_src>

<mosaic_0001>
module attributes {stable_mosaic.version = 11 : i64} {
  func.func @classifier_kernel(%arg0: i32, %arg1: i32, %arg2: memref<16x32xf32, #tpu.memory_space<vmem>>, %arg3: memref<1x32xf32, #tpu.memory_space<vmem>>, %arg4: memref<1x32xf32, #tpu.memory_space<vmem>>, %arg5: memref<32x16xf32, #tpu.memory_space<vmem>>, %arg6: memref<1x16xf32, #tpu.memory_space<vmem>>, %arg7: memref<16x16xf32, #tpu.memory_space<vmem>>, %arg8: memref<16x32xf32, #tpu.memory_space<vmem>>) attributes {dimension_semantics = [#tpu.dimension_semantics<parallel>, #tpu.dimension_semantics<arbitrary>], iteration_bounds = array<i64: 1, 1>, scalar_prefetch = 0 : i64, scratch_operands = 1 : i64, tpu.core_type = #tpu.core_type<tc>, window_params = [{transform_indices = @transform_0, window_bounds = array<i64: 16, 32>}, {pipeline_mode = #tpu.pipeline_mode<synchronous>, transform_indices = @transform_1, window_bounds = array<i64: 1, 32>}, {pipeline_mode = #tpu.pipeline_mode<synchronous>, transform_indices = @transform_2, window_bounds = array<i64: 1, 32>}, {transform_indices = @transform_3, window_bounds = array<i64: 32, 16>}, {transform_indices = @transform_4, window_bounds = array<i64: 1, 16>}, {transform_indices = @transform_5, window_bounds = array<i64: 16, 16>}]} {
    %c0_i32 = arith.constant 0 : i32
    %0 = arith.cmpi eq, %arg1, %c0_i32 : i32
    %1 = arith.extui %0 : i1 to i32
    %c0_i32_0 = arith.constant 0 : i32
    %2 = arith.cmpi ne, %1, %c0_i32_0 : i32
    scf.if %2 {
      %c0_8 = arith.constant 0 : index
      %c0_9 = arith.constant 0 : index
      %10 = vector.load %arg2[%c0_8, %c0_9] : memref<16x32xf32, #tpu.memory_space<vmem>>, vector<16x32xf32>
      %cst_10 = arith.constant dense<0.000000e+00> : vector<16xf32>
      %11 = vector.multi_reduction <add>, %10, %cst_10 [1] : vector<16x32xf32> to vector<16xf32>
      %12 = vector.shape_cast %11 : vector<16xf32> to vector<16x1xf32>
      %cst_11 = arith.constant 3.200000e+01 : f32
      %13 = vector.broadcast %cst_11 : f32 to vector<16x1xf32>
      %14 = arith.divf %12, %13 : vector<16x1xf32>
      %15 = vector.broadcast %14 : vector<16x1xf32> to vector<16x32xf32>
      %16 = arith.subf %10, %15 : vector<16x32xf32>
      %17 = arith.mulf %16, %16 : vector<16x32xf32>
      %cst_12 = arith.constant dense<0.000000e+00> : vector<16xf32>
      %18 = vector.multi_reduction <add>, %17, %cst_12 [1] : vector<16x32xf32> to vector<16xf32>
      %19 = vector.shape_cast %18 : vector<16xf32> to vector<16x1xf32>
      %cst_13 = arith.constant 3.200000e+01 : f32
      %20 = vector.broadcast %cst_13 : f32 to vector<16x1xf32>
      %21 = arith.divf %19, %20 : vector<16x1xf32>
      %cst_14 = arith.constant 9.99999974E-6 : f32
      %22 = vector.broadcast %cst_14 : f32 to vector<16x1xf32>
      %23 = arith.addf %21, %22 : vector<16x1xf32>
      %24 = math.rsqrt %23 : vector<16x1xf32>
      %25 = vector.broadcast %24 : vector<16x1xf32> to vector<16x32xf32>
      %26 = arith.mulf %16, %25 : vector<16x32xf32>
      %c0_15 = arith.constant 0 : index
      %c0_16 = arith.constant 0 : index
      %27 = vector.load %arg3[%c0_15, %c0_16] : memref<1x32xf32, #tpu.memory_space<vmem>>, vector<1x32xf32>
      %28 = vector.broadcast %27 : vector<1x32xf32> to vector<16x32xf32>
      %29 = arith.mulf %26, %28 : vector<16x32xf32>
      %c0_17 = arith.constant 0 : index
      %c0_18 = arith.constant 0 : index
      %30 = vector.load %arg4[%c0_17, %c0_18] : memref<1x32xf32, #tpu.memory_space<vmem>>, vector<1x32xf32>
      %31 = vector.broadcast %30 : vector<1x32xf32> to vector<16x32xf32>
      %32 = arith.addf %29, %31 : vector<16x32xf32>
      %c0_19 = arith.constant 0 : index
      %c0_20 = arith.constant 0 : index
      %33 = vector.load %arg8[%c0_19, %c0_20] : memref<16x32xf32, #tpu.memory_space<vmem>>, vector<16x32xf32>
      tpu.vector_store %arg8[%c0_19, %c0_20], %32 {strides = array<i32>} : memref<16x32xf32, #tpu.memory_space<vmem>>, vector<16x32xf32>,
    } else {
    }
    %c0 = arith.constant 0 : index
    %c0_1 = arith.constant 0 : index
    %3 = vector.load %arg8[%c0, %c0_1] : memref<16x32xf32, #tpu.memory_space<vmem>>, vector<16x32xf32>
    %c0_2 = arith.constant 0 : index
    %c0_3 = arith.constant 0 : index
    %4 = vector.load %arg5[%c0_2, %c0_3] : memref<32x16xf32, #tpu.memory_space<vmem>>, vector<32x16xf32>
    %cst = arith.constant dense<0.000000e+00> : vector<16x16xf32>
    %5 = tpu.matmul %3, %4, %cst {dimension_numbers = #tpu.dot_dimension_numbers<[1], [0], [0], [1], [0, 0, 1, 1], [], []>} : vector<16x32xf32>, vector<32x16xf32>, vector<16x16xf32> -> vector<16x16xf32>
    %c0_4 = arith.constant 0 : index
    %c0_5 = arith.constant 0 : index
    %6 = vector.load %arg6[%c0_4, %c0_5] : memref<1x16xf32, #tpu.memory_space<vmem>>, vector<1x16xf32>
    %7 = vector.broadcast %6 : vector<1x16xf32> to vector<16x16xf32>
    %8 = arith.addf %5, %7 : vector<16x16xf32>
    %c0_6 = arith.constant 0 : index
    %c0_7 = arith.constant 0 : index
    %9 = vector.load %arg7[%c0_6, %c0_7] : memref<16x16xf32, #tpu.memory_space<vmem>>, vector<16x16xf32>
    tpu.vector_store %arg7[%c0_6, %c0_7], %8 {strides = array<i32>} : memref<16x16xf32, #tpu.memory_space<vmem>>, vector<16x16xf32>,
    return
  }
  func.func @transform_0(%arg0: i32, %arg1: i32) -> (i32, i32) {
    %c0_i32 = arith.constant 0 : i32
    %c0_i32_0 = arith.constant 0 : i32
    return %arg0, %c0_i32 : i32, i32
  }
  func.func @transform_1(%arg0: i32, %arg1: i32) -> (i32, i32) {
    %c0_i32 = arith.constant 0 : i32
    %c0_i32_0 = arith.constant 0 : i32
    %c0_i32_1 = arith.constant 0 : i32
    return %c0_i32, %c0_i32_0 : i32, i32
  }
  func.func @transform_2(%arg0: i32, %arg1: i32) -> (i32, i32) {
    %c0_i32 = arith.constant 0 : i32
    %c0_i32_0 = arith.constant 0 : i32
    %c0_i32_1 = arith.constant 0 : i32
    return %c0_i32, %c0_i32_0 : i32, i32
  }
  func.func @transform_3(%arg0: i32, %arg1: i32) -> (i32, i32) {
    %c0_i32 = arith.constant 0 : i32
    %c0_i32_0 = arith.constant 0 : i32
    return %c0_i32, %arg1 : i32, i32
  }
  func.func @transform_4(%arg0: i32, %arg1: i32) -> (i32, i32) {
    %c0_i32 = arith.constant 0 : i32
    %c0_i32_0 = arith.constant 0 : i32
    return %c0_i32, %arg1 : i32, i32
  }
  func.func @transform_5(%arg0: i32, %arg1: i32) -> (i32, i32) {
    %c0_i32 = arith.constant 0 : i32
    return %arg0, %arg1 : i32, i32
  }
}

</mosaic_0001>

<bundles_post_ra>
// kernel: classifier_forward.1
= control target key start
LH: loop header
LB: loop body
LE: loop exit
PB: predicated region body
PF: predicated region fallthrough
CT: control target
= control target key end

     0   :  { %vm27_vm0 = vcmask 261120   ;;  %s271_s0 = inlined_call_operand.vmem [shape: f32[16,32], index: 0, kind: input, shape index: {}]   ;;  %s272_s1 = inlined_call_operand.vmem [shape: f32[1,32], index: 1, kind: input, shape index: {}]   ;;  %s273_s2 = inlined_call_operand.vmem [shape: f32[1,32], index: 2, kind: input, shape index: {}]   ;;  %s274_s3 = inlined_call_operand.vmem [shape: f32[32,16], index: 3, kind: input, shape index: {}]   ;;  %s275_s4 = inlined_call_operand.vmem [shape: f32[1,16], index: 4, kind: input, shape index: {}]   ;;  %s276_s5 = inlined_call_operand.hbm [shape: f32[16,16], index: 5, kind: output, shape index: {}]  }
   0x1   :  { %v25_v0 = vld [vmem:[%s271_s0] sm:$0xff] }
   0x2   :  { %v28_v1 = vsel %vm27_vm0, %v25_v0, 0.0 }
   0x3   :  { %29 = vadd.xlane.f32.xlu0 %v28_v1 }
   0x4   :  { %10 = vsyncpa [#allocation4], 0  ;;  %v26_v2 = vld [vmem:[%s271_s0 + $0x8] sm:$0xff]  ;;  %v199_v4 = vmov 32.0   ;;  %v98_v21 = vld [vmem:[%s274_s3 + $0x18] sm:$0xff]  ;;  %vm133_vm8 = vcmask 130048  }
   0x5   :  { %v31_v3 = vsel %vm27_vm0, %v26_v2, 0.0  ;;  %167 = vrcp.f32 %v199_v4  ;;  %122 = vmatpush.msra.mxu0 %v98_v21  ;;  %156 = vmatpush.msra.mxu1 %v98_v21  ;;  %v97_v22 = vld [vmem:[%s274_s3 + $0x10] sm:$0xff]  ;;  %v96_v25 = vld [vmem:[%s274_s3 + $0x8] sm:$0xff]  ;;  %v95_v27 = vld [vmem:[%s274_s3] sm:$0xff]  ;;  %s200_s7 = smov [#allocation3]   ;;  %s142_s11 = sshll.u32 %s276_s5, 4  ;;  %s143_s11 = int_to_ptr.hbm [resolvable:$true] %s142_s11 }
   0x6   :  { %v164_v39 = vld [vmem:[%s272_s1] ss:$0 sm:$0xff]  ;;  %s140_s8 = sshll.u32 %s200_s7, 4  ;;  %s201_s12 = smov 128   ;;  %s141_s8 = int_to_ptr.vmem [resolvable:$true] %s140_s8 }
   0x7   :  { %123 = vmatpush.msra.mxu0 %v97_v22  ;;  %157 = vmatpush.msra.mxu1 %v97_v22  ;;  %v165_v42 = vld [vmem:[%s273_s2] ss:$0 sm:$0xff]  ;;  %s202_s13 = smov 8  }
   0x8   :  { %v166_v55 = vld [vmem:[%s275_s4] ss:$0 sm:$0xff] }
   0x9   :  { %124 = vmatpush.msra.mxu0 %v96_v25  ;;  %158 = vmatpush.msra.mxu1 %v96_v25 }
   0xb   :  { %32 = vadd.xlane.f32.xlu0 %v31_v3  ;;  %v168_v5 = vpop.eup %167  ;;  %125 = vmatpush.msra.mxu0 %v95_v27 }
   0xc   :  { %v35_v6 = vmul.f32 32.0, %v168_v5  ;;  %vm39_vm1 = vweird.f32 %v168_v5  ;;  %159 = vmatpush.msra.mxu1 %v95_v27 }
   0xe   :  { %v36_v7 = vsub.f32 1.0, %v35_v6 }
  0x10   :  { %v37_v8 = vmul.f32 %v168_v5, %v36_v7 }
  0x12   :  { %v38_v9 = vadd.f32 %v168_v5, %v37_v8 }
  0x14   :  { %v40_v10 = vsel %vm39_vm1, %v168_v5, %v38_v9 }
  0x76   :  { %v30_v11 = vpop.xlane.xlu0 %29 }
  0x77   :  { %v41_v12 = vmul.f32 %v40_v10, %v30_v11 }
  0x79   :  { %v43_v13 = vsub.f32 %v25_v0, %v41_v12 }
  0x7b   :  { %v45_v14 = vmul.f32 %v43_v13, %v43_v13 }
  0x7d   :  { %v47_v15 = vsel %vm27_vm0, %v45_v14, 0.0 }
  0x7e   :  { %48 = vadd.xlane.f32.xlu1 %v47_v15  ;;  %v33_v16 = vpop.xlane.xlu0 %32 }
  0x7f   :  { %v42_v17 = vmul.f32 %v40_v10, %v33_v16 }
  0x81   :  { %v44_v18 = vsub.f32 %v26_v2, %v42_v17 }
  0x83   :  { %v46_v19 = vmul.f32 %v44_v18, %v44_v18 }
  0x85   :  { %v50_v20 = vsel %vm27_vm0, %v46_v19, 0.0 }
  0x86   :  { %51 = vadd.xlane.f32.xlu1 %v50_v20 }
  0xf1   :  { %v49_v23 = vpop.xlane.xlu1 %48 }
  0xf2   :  { %v53_v24 = vmul.f32 %v49_v23, %v40_v10 }
  0xf4   :  { %v55_v26 = vadd.f32 1e-05, %v53_v24 }
  0xf6   :  { %169 = vrsqrt.f32 %v55_v26  ;;  %vm63_vm3 = vweird.f32 %v55_v26 }
  0xf9   :  { %v52_v28 = vpop.xlane.xlu1 %51 }
  0xfa   :  { %v54_v29 = vmul.f32 %v52_v28, %v40_v10 }
  0xfc   :  { %v170_v30 = vpop.eup %169  ;;  %v56_v31 = vadd.f32 1e-05, %v54_v29 }
  0xfd   :  { %v58_v32 = vmul.f32 %v170_v30, %v55_v26  ;;  %vm64_vm2 = vweird.f32 %v170_v30 }
  0xfe   :  { %171 = vrsqrt.f32 %v56_v31  ;;  %vm65_vm4 = vmor %vm63_vm3, %vm64_vm2  ;;  %vm73_vm6 = vweird.f32 %v56_v31 }
  0xff   :  { %v59_v33 = vmul.f32 %v170_v30, %v58_v32 }
 0x101   :  { %v60_v34 = vmul.f32 0.5, %v59_v33 }
 0x103   :  { %v61_v35 = vsub.f32 1.5, %v60_v34 }
 0x104   :  { %v172_v36 = vpop.eup %171 }
 0x105   :  { %v62_v37 = vmul.f32 %v170_v30, %v61_v35  ;;  %v68_v38 = vmul.f32 %v172_v36, %v56_v31  ;;  %vm74_vm5 = vweird.f32 %v172_v36 }
 0x106   :  { %vm75_vm7 = vmor %vm73_vm6, %vm74_vm5 }
 0x107   :  { %v66_v40 = vsel %vm65_vm4, %v170_v30, %v62_v37  ;;  %v69_v41 = vmul.f32 %v172_v36, %v68_v38 }
 0x108   :  { %v77_v43 = vmul.f32 %v66_v40, %v43_v13 }
 0x109   :  { %v70_v44 = vmul.f32 0.5, %v69_v41 }
 0x10a   :  { %v83_v45 = vmul.f32 %v164_v39, %v77_v43 }
 0x10b   :  { %v71_v46 = vsub.f32 1.5, %v70_v44 }
 0x10c   :  { %v89_v47 = vadd.f32 %v165_v42, %v83_v45 }
 0x10d   :  { %v72_v48 = vmul.f32 %v172_v36, %v71_v46 }
 0x10e   :  { %91 = vst.msk [vmem:[#allocation2] sm:$0xff] %vm27_vm0, %v89_v47 }
 0x10f   :  { %v76_v49 = vsel %vm75_vm7, %v172_v36, %v72_v48 }
 0x110   :  { %v78_v50 = vmul.f32 %v76_v49, %v44_v18 }
 0x112   :  { %v84_v51 = vmul.f32 %v164_v39, %v78_v50 }
 0x114   :  { %v90_v52 = vadd.f32 %v165_v42, %v84_v51 }
 0x115   :  { %v93_v53 = vld [vmem:[#allocation2] sm:$0xff] }
 0x116   :  { %92 = vst.msk [vmem:[#allocation2 + $0x8] sm:$0xff] %vm27_vm0, %v90_v52  ;;  %154 = vmatmul.msk.f32.vlgmr.msra.gmra.mxu0 %vm27_vm0, %v93_v53 }
 0x11d   :  { %v94_v54 = vld [vmem:[#allocation2 + $0x8] sm:$0xff] }
 0x11e   :  { %155 = vmatmul.msk.f32.vlgmr.msra.gmra.mxu1 %vm27_vm0, %v94_v54 }
 0x193   :  { %v127_v56 = vpop.f32.mrf.mxu0 }
 0x194   :  { %v128_v57 = vadd.f32 %v166_v55, %v127_v56 }
 0x196   :  { %134 = vst.msk [vmem:[#allocation3] sm:$0xff] %vm133_vm8, %v128_v57 }
 0x19b   :  { %v130_v58 = vpop.f32.mrf.mxu1 }
 0x19c   :  { %v131_v59 = vadd.f32 %v166_v55, %v130_v58 }
 0x19e   :  { %135 = vst.msk [vmem:[#allocation3 + $0x8] sm:$0xff] %vm133_vm8, %v131_v59 }
 0x19f   :  { %148 = dma.vmem_to_hbm [thread:$0]  %s141_s8, 256, %s143_s11, [#allocation4], %s201_s12, %s201_s12, %s202_s13  }
 0x1a0   :  { %197 = dma.done.wait [#allocation4], 256  }
 0x1a1   :  { %198 = vsyncadd [#allocation4], 4294967040 }
 0x1a2   :  { %153 = vsyncpa [#allocation4], 1 }

</bundles_post_ra>
